<compile_context>
chip_gen: v7x
topology: tpu7x:2x2x1
jax: 0.10.0
libtpu: 0.0.40
codegen_flags: <defaults>
</compile_context>

<pallas_src>
import functools

import jax
import jax.numpy as jnp
from jax.experimental import pallas as pl
from jax.experimental.pallas import tpu as pltpu


def _round_down_to_multiple(x, m):
    return max(m, (x // m) * m)


def _wce_partial_kernel(x_ref, coef_ref, out_ref, *, n_valid):
    """Per-tile partial of sum_i coef_i * sum_c log_softmax(x_i)[c].

    x_ref    : (TILE_N, C)   logits tile (any float dtype; compute in f32)
    coef_ref : (TILE_N, 1)   f32, coef_i = -target_i * class_weight[target_i]
    out_ref  : (1, 8, 128)   f32, tile partial broadcast into a full vreg slab
                             (lane-dense, unmasked store)
    """
    pid = pl.program_id(0)
    tile_n, c = x_ref.shape

    x = x_ref[...].astype(jnp.float32)          # (TILE_N, C), f32 compute (v5e-safe)
    coef = coef_ref[...]                        # (TILE_N, 1)

    # log-softmax row sum without materializing logp:
    #   sum_c (x[c] - logsumexp(x)) = sum_c x[c] - C * logsumexp(x)
    m = jnp.max(x, axis=1, keepdims=True)                                 # (TILE_N, 1)
    lse = m + jnp.log(jnp.sum(jnp.exp(x - m), axis=1, keepdims=True))     # (TILE_N, 1)
    row_sum = jnp.sum(x, axis=1, keepdims=True) - c * lse                 # (TILE_N, 1)

    # mask rows past the true batch size (ragged last tile reads garbage)
    row = pid * tile_n + jax.lax.broadcasted_iota(jnp.int32, (tile_n, 1), 0)
    per_sample = jnp.where(row < n_valid, coef * row_sum, 0.0)            # (TILE_N, 1)

    partial = jnp.sum(per_sample)
    out_ref[...] = jnp.full(out_ref.shape, partial, dtype=out_ref.dtype)


@jax.jit
def custom_cross_entropy_loss(logits, target):
    """logits: (N, C) float (f32 or bf16); target: (N,) int32 labels in [0, C)."""
    n, c = logits.shape

    # class weights: 1/bincount(target). Static length=C is equivalent to
    # torch.bincount's max(target)+1 length here: absent classes are never
    # indexed by `target`, so their inf weights are unreachable.
    counts = jnp.bincount(target, length=c).astype(jnp.float32)
    class_weights = 1.0 / counts
    coef = -(target.astype(jnp.float32) * class_weights[target])          # (N,)
    coef = coef.reshape(n, 1)

    # Batch tiling: biggest tile that keeps the double-buffered logits stream
    # comfortably under default scoped VMEM on every generation
    # (v5e 16 MiB, v6e 32 MiB, v7x 32-of-64 MiB): ~4 MiB per logits buffer.
    itemsize = jnp.dtype(logits.dtype).itemsize
    cap = max(8, (4 * 1024 * 1024) // max(1, c * itemsize))
    if n <= cap:
        tile_n = n                                  # single block == full array dims
    else:
        tile_n = _round_down_to_multiple(min(cap, 1024), 8)
    num_tiles = pl.cdiv(n, tile_n)

    # TODO(synk): for vocab-scale C, add a second ("arbitrary") grid axis over C
    # with an online logsumexp so per-step VMEM is independent of C.
    # TODO(synk): for tiny C (e.g. C=2) a wrapper-side lane-dense repack of
    # (N, C) would use all 128 lanes; skipped to keep the general-C path simple.
    out = pl.pallas_call(
        functools.partial(_wce_partial_kernel, n_valid=n),
        out_shape=jax.ShapeDtypeStruct((num_tiles, 8, 128), jnp.float32),
        grid=(num_tiles,),
        in_specs=[
            pl.BlockSpec((tile_n, c), lambda i: (i, 0)),
            pl.BlockSpec((tile_n, 1), lambda i: (i, 0)),
        ],
        out_specs=pl.BlockSpec((1, 8, 128), lambda i: (i, 0, 0)),
        compiler_params=pltpu.CompilerParams(
            dimension_semantics=("parallel",),
            vmem_limit_bytes=32 * 1024 * 1024,
        ),
    )(logits, coef)

    # tiny final reduction over per-tile partials, then the batch mean
    return jnp.sum(out[:, 0, 0]) / n


if __name__ == "__main__":
    key = jax.random.PRNGKey(0)
    k_logits, k_target = jax.random.split(key)

    N, C = 64, 2  # binary classification, small batch
    logits = jax.random.normal(k_logits, (N, C), dtype=jnp.float32)
    target = jax.random.randint(k_target, (N,), 0, C, dtype=jnp.int32)

    loss = custom_cross_entropy_loss(logits, target)
    jax.block_until_ready(loss)

    # quick sanity check against a pure-JAX reference of the same formula
    logp_ref = jax.nn.log_softmax(logits, axis=1)
    counts_ref = jnp.bincount(target, length=C)
    cw_ref = 1.0 / counts_ref.astype(jnp.float32)
    wl_ref = -target[:, None].astype(jnp.float32) * logp_ref * cw_ref[target][:, None]
    loss_ref = jnp.mean(jnp.sum(wl_ref, axis=1))
    assert jnp.allclose(loss, loss_ref, rtol=1e-5, atol=1e-5), (loss, loss_ref)

    print("KERNEL_OK")
</pallas_src>

<mosaic_0001>
module attributes {stable_mosaic.version = 11 : i64} {
  func.func private @main(%arg0: i32) attributes {dimension_semantics = [#tpu.dimension_semantics<core_parallel>], iteration_bounds = array<i64: 2>, tpu.core_type = #tpu.core_type<sc_scalar_subcore>, window_params = []} {
    return
  }
}

module attributes {stable_mosaic.version = 11 : i64} {
  func.func private @main(%arg0: i32) attributes {dimension_semantics = [#tpu.dimension_semantics<core_parallel>], iteration_bounds = array<i64: 2>, tpu.core_type = #tpu.core_type<sc_scalar_subcore>, window_params = []} {
    return
  }
}

module attributes {stable_mosaic.version = 11 : i64} {
  func.func @_wce_partial_kernel(%arg0: i32, %arg1: memref<64x2xf32, #tpu.memory_space<vmem>>, %arg2: memref<64x1xf32, #tpu.memory_space<vmem>>, %arg3: memref<1x8x128xf32, #tpu.memory_space<vmem>>) attributes {dimension_semantics = [#tpu.dimension_semantics<parallel>], iteration_bounds = array<i64: 1>, scalar_prefetch = 0 : i64, scratch_operands = 0 : i64, tpu.core_type = #tpu.core_type<tc>, window_params = [{transform_indices = @transform_0, window_bounds = array<i64: 64, 2>}, {transform_indices = @transform_1, window_bounds = array<i64: 64, 1>}, {transform_indices = @transform_2, window_bounds = array<i64: 1, 8, 128>}]} {
    %c0 = arith.constant 0 : index
    %c0_0 = arith.constant 0 : index
    %0 = vector.load %arg1[%c0, %c0_0] : memref<64x2xf32, #tpu.memory_space<vmem>>, vector<64x2xf32>
    %c0_1 = arith.constant 0 : index
    %c0_2 = arith.constant 0 : index
    %1 = vector.load %arg2[%c0_1, %c0_2] : memref<64x1xf32, #tpu.memory_space<vmem>>, vector<64x1xf32>
    %cst = arith.constant dense<0xFF800000> : vector<64xf32>
    %2 = vector.multi_reduction <maximumf>, %0, %cst [1] : vector<64x2xf32> to vector<64xf32>
    %3 = vector.shape_cast %2 : vector<64xf32> to vector<64x1xf32>
    %4 = vector.broadcast %3 : vector<64x1xf32> to vector<64x2xf32>
    %5 = arith.subf %0, %4 : vector<64x2xf32>
    %6 = math.exp %5 : vector<64x2xf32>
    %cst_3 = arith.constant dense<0.000000e+00> : vector<64xf32>
    %7 = vector.multi_reduction <add>, %6, %cst_3 [1] : vector<64x2xf32> to vector<64xf32>
    %8 = vector.shape_cast %7 : vector<64xf32> to vector<64x1xf32>
    %9 = math.log %8 : vector<64x1xf32>
    %10 = arith.addf %3, %9 : vector<64x1xf32>
    %cst_4 = arith.constant dense<0.000000e+00> : vector<64xf32>
    %11 = vector.multi_reduction <add>, %0, %cst_4 [1] : vector<64x2xf32> to vector<64xf32>
    %12 = vector.shape_cast %11 : vector<64xf32> to vector<64x1xf32>
    %cst_5 = arith.constant 2.000000e+00 : f32
    %13 = vector.broadcast %cst_5 : f32 to vector<64x1xf32>
    %14 = arith.mulf %13, %10 : vector<64x1xf32>
    %15 = arith.subf %12, %14 : vector<64x1xf32>
    %c64_i32 = arith.constant 64 : i32
    %16 = arith.muli %arg0, %c64_i32 : i32
    %17 = tpu.iota {dimensions = array<i32: 0>} : vector<64x1xi32>
    %18 = vector.broadcast %16 : i32 to vector<64x1xi32>
    %19 = arith.addi %18, %17 : vector<64x1xi32>
    %c64_i32_6 = arith.constant 64 : i32
    %20 = vector.broadcast %c64_i32_6 : i32 to vector<64x1xi32>
    %21 = arith.cmpi slt, %19, %20 : vector<64x1xi32>
    %22 = arith.mulf %1, %15 : vector<64x1xf32>
    %cst_7 = arith.constant 0.000000e+00 : f32
    %23 = vector.broadcast %cst_7 : f32 to vector<64x1xf32>
    %24 = arith.select %21, %22, %23 : vector<64x1xi1>, vector<64x1xf32>
    %25 = vector.shape_cast %24 : vector<64x1xf32> to vector<1x64x1xf32>
    %cst_8 = arith.constant dense<0.000000e+00> : vector<1xf32>
    %26 = vector.multi_reduction <add>, %25, %cst_8 [1, 2] : vector<1x64x1xf32> to vector<1xf32>
    %27 = vector.shape_cast %26 : vector<1xf32> to vector<1x1x1xf32>
    %28 = vector.extract %27[0, 0, 0] : f32 from vector<1x1x1xf32>
    %29 = vector.broadcast %28 : f32 to vector<1x8x128xf32>
    %c0_9 = arith.constant 0 : index
    %c0_10 = arith.constant 0 : index
    %c0_11 = arith.constant 0 : index
    %30 = vector.load %arg3[%c0_9, %c0_10, %c0_11] : memref<1x8x128xf32, #tpu.memory_space<vmem>>, vector<1x8x128xf32>
    tpu.vector_store %arg3[%c0_9, %c0_10, %c0_11], %29 {strides = array<i32>} : memref<1x8x128xf32, #tpu.memory_space<vmem>>, vector<1x8x128xf32>,
    return
  }
  func.func @transform_0(%arg0: i32) -> (i32, i32) {
    %c0_i32 = arith.constant 0 : i32
    %c0_i32_0 = arith.constant 0 : i32
    return %arg0, %c0_i32 : i32, i32
  }
  func.func @transform_1(%arg0: i32) -> (i32, i32) {
    %c0_i32 = arith.constant 0 : i32
    %c0_i32_0 = arith.constant 0 : i32
    return %arg0, %c0_i32 : i32, i32
  }
  func.func @transform_2(%arg0: i32) -> (i32, i32, i32) {
    %c0_i32 = arith.constant 0 : i32
    %c0_i32_0 = arith.constant 0 : i32
    %c0_i32_1 = arith.constant 0 : i32
    return %arg0, %c0_i32, %c0_i32_0 : i32, i32, i32
  }
}

</mosaic_0001>

<bundles_post_ra>
// kernel: custom_cross_entropy_loss.1
= control target key start
LH: loop header
LB: loop body
LE: loop exit
PB: predicated region body
PF: predicated region fallthrough
CT: control target
= control target key end

     0   :  { %vm27_vm0 = vcmask 15360   ;;  %vm207_vm1 = vcmask 7168   ;;  %s442_s0 = inlined_call_operand.vmem [shape: f32[64,2], index: 0, kind: input, shape index: {}]   ;;  %s443_s1 = inlined_call_operand.vmem [shape: f32[64,1], index: 1, kind: input, shape index: {}]   ;;  %s444_s2 = inlined_call_operand.vmem [shape: f32[1,8,128], index: 2, kind: output, shape index: {}]  }
   0x1   :  { %v290_v0 = vld [vmem:[%s442_s0] sm:$0xff]  ;;  %v295_v1 = vld [vmem:[%s442_s0 + $0x10] sm:$0xff]  ;;  %v300_v2 = vld [vmem:[%s442_s0 + $0x8] sm:$0xff] }
   0x2   :  { %v28_v3 = vsel %vm27_vm0, %v290_v0, -inf  ;;  %v34_v4 = vsel %vm27_vm0, %v295_v1, -inf  ;;  %v309_v5 = vld [vmem:[%s442_s0 + $0x18] sm:$0xff]  ;;  %v31_v6 = vsel %vm27_vm0, %v300_v2, -inf  ;;  %v318_v8 = vld [vmem:[%s442_s0 + $0x20] sm:$0xff]  ;;  %v323_v9 = vld [vmem:[%s442_s0 + $0x28] sm:$0xff] }
   0x3   :  { %29 = vmax.xlane.f32.xlu0 %v28_v3  ;;  %35 = vmax.xlane.f32.xlu1 %v34_v4  ;;  %v37_v7 = vsel %vm27_vm0, %v309_v5, -inf  ;;  %v40_v10 = vsel %vm27_vm0, %v318_v8, -inf  ;;  %v43_v11 = vsel %vm27_vm0, %v323_v9, -inf  ;;  %v332_v12 = vld [vmem:[%s442_s0 + $0x30] sm:$0xff]  ;;  %v337_v13 = vld [vmem:[%s442_s0 + $0x38] sm:$0xff]  ;;  %v124_v56 = vsel %vm27_vm0, %v290_v0, 0.0 }
   0x4   :  { %v46_v14 = vsel %vm27_vm0, %v332_v12, -inf  ;;  %v49_v15 = vsel %vm27_vm0, %v337_v13, -inf  ;;  %v127_v57 = vsel %vm27_vm0, %v300_v2, 0.0  ;;  %v130_v58 = vsel %vm27_vm0, %v295_v1, 0.0 }
   0x5   :  { %v133_v59 = vsel %vm27_vm0, %v309_v5, 0.0  ;;  %v136_v60 = vsel %vm27_vm0, %v318_v8, 0.0  ;;  %v139_v61 = vsel %vm27_vm0, %v323_v9, 0.0  ;;  %v142_v62 = vsel %vm27_vm0, %v332_v12, 0.0 }
   0x6   :  { %v145_v63 = vsel %vm27_vm0, %v337_v13, 0.0 }
   0x7   :  { %32 = vmax.xlane.f32.xlu0 %v31_v6  ;;  %38 = vmax.xlane.f32.xlu1 %v37_v7 }
   0xb   :  { %41 = vmax.xlane.f32.xlu0 %v40_v10  ;;  %44 = vmax.xlane.f32.xlu1 %v43_v11 }
   0xf   :  { %47 = vmax.xlane.f32.xlu0 %v46_v14  ;;  %50 = vmax.xlane.f32.xlu1 %v49_v15 }
  0x90   :  { %v343_v16 = vpop.xlane.xlu0 %29  ;;  %v345_v17 = vpop.xlane.xlu1 %35 }
  0x91   :  { %v52_v18 = vsub.f32 %v290_v0, %v343_v16  ;;  %v54_v19 = vsub.f32 %v295_v1, %v345_v17 }
  0x93   :  { %v60_v20 = vmul.f32 1.442695, %v52_v18  ;;  %v64_v21 = vmul.f32 1.442695, %v54_v19 }
  0x94   :  { %v351_v22 = vpop.xlane.xlu0 %32  ;;  %v353_v23 = vpop.xlane.xlu1 %38 }
  0x95   :  { %240 = vpow2.f32 %v60_v20  ;;  %v53_v24 = vsub.f32 %v300_v2, %v351_v22  ;;  %v55_v25 = vsub.f32 %v309_v5, %v353_v23 }
  0x96   :  { %242 = vpow2.f32 %v64_v21 }
  0x97   :  { %v62_v26 = vmul.f32 1.442695, %v53_v24  ;;  %v66_v27 = vmul.f32 1.442695, %v55_v25  ;;  %v19_v24 = vld [vmem:[%s443_s1] sm:$0xff] }
  0x98   :  { %v359_v28 = vpop.xlane.xlu0 %41  ;;  %v361_v29 = vpop.xlane.xlu1 %44 }
  0x99   :  { %244 = vpow2.f32 %v62_v26  ;;  %v56_v30 = vsub.f32 %v318_v8, %v359_v28  ;;  %v57_v31 = vsub.f32 %v323_v9, %v361_v29 }
  0x9a   :  { %246 = vpow2.f32 %v66_v27 }
  0x9b   :  { %v68_v32 = vmul.f32 1.442695, %v56_v30  ;;  %v70_v33 = vmul.f32 1.442695, %v57_v31 }
  0x9c   :  { %v367_v34 = vpop.xlane.xlu0 %47  ;;  %v369_v35 = vpop.xlane.xlu1 %50 }
  0x9d   :  { %248 = vpow2.f32 %v68_v32  ;;  %v58_v36 = vsub.f32 %v332_v12, %v367_v34  ;;  %v59_v37 = vsub.f32 %v337_v13, %v369_v35 }
  0x9e   :  { %250 = vpow2.f32 %v70_v33  ;;  %v20_v33 = vld [vmem:[%s443_s1 + $0x8] sm:$0xff] }
  0x9f   :  { %v241_v38 = vpop.eup %240  ;;  %v72_v39 = vmul.f32 1.442695, %v58_v36  ;;  %v74_v40 = vmul.f32 1.442695, %v59_v37 }
  0xa0   :  { %v243_v41 = vpop.eup %242  ;;  %v76_v42 = vsel %vm27_vm0, %v241_v38, 0.0  ;;  %v21_v38 = vld [vmem:[%s443_s1 + $0x10] sm:$0xff] }
  0xa1   :  { %252 = vpow2.f32 %v72_v39  ;;  %77 = vadd.xlane.f32.xlu0 %v76_v42  ;;  %v82_v43 = vsel %vm27_vm0, %v243_v41, 0.0 }
  0xa2   :  { %254 = vpow2.f32 %v74_v40 }
  0xa3   :  { %v245_v44 = vpop.eup %244 }
  0xa4   :  { %v247_v45 = vpop.eup %246  ;;  %v79_v46 = vsel %vm27_vm0, %v245_v44, 0.0 }
  0xa5   :  { %83 = vadd.xlane.f32.xlu0 %v82_v43  ;;  %80 = vadd.xlane.f32.xlu1 %v79_v46  ;;  %v85_v47 = vsel %vm27_vm0, %v247_v45, 0.0 }
  0xa7   :  { %v249_v48 = vpop.eup %248 }
  0xa8   :  { %v251_v49 = vpop.eup %250  ;;  %v88_v50 = vsel %vm27_vm0, %v249_v48, 0.0 }
  0xa9   :  { %86 = vadd.xlane.f32.xlu1 %v85_v47  ;;  %89 = vadd.xlane.f32.xlu0 %v88_v50  ;;  %v91_v51 = vsel %vm27_vm0, %v251_v49, 0.0  ;;  %v22_v50 = vld [vmem:[%s443_s1 + $0x18] sm:$0xff] }
  0xab   :  { %v253_v52 = vpop.eup %252 }
  0xac   :  { %v255_v53 = vpop.eup %254  ;;  %v94_v54 = vsel %vm27_vm0, %v253_v52, 0.0 }
  0xad   :  { %92 = vadd.xlane.f32.xlu1 %v91_v51  ;;  %95 = vadd.xlane.f32.xlu0 %v94_v54  ;;  %v97_v55 = vsel %vm27_vm0, %v255_v53, 0.0 }
  0xb1   :  { %98 = vadd.xlane.f32.xlu1 %v97_v55  ;;  %125 = vadd.xlane.f32.xlu0 %v124_v56 }
  0xb5   :  { %128 = vadd.xlane.f32.xlu1 %v127_v57  ;;  %131 = vadd.xlane.f32.xlu0 %v130_v58 }
  0xb9   :  { %134 = vadd.xlane.f32.xlu1 %v133_v59  ;;  %137 = vadd.xlane.f32.xlu0 %v136_v60 }
  0xbd   :  { %140 = vadd.xlane.f32.xlu1 %v139_v61  ;;  %143 = vadd.xlane.f32.xlu0 %v142_v62 }
  0xc1   :  { %146 = vadd.xlane.f32.xlu1 %v145_v63 }
 0x12e   :  { %v78_v0 = vpop.xlane.xlu0 %77 }
 0x12f   :  { %256 = vlog2.f32 %v78_v0 }
 0x132   :  { %v81_v1 = vpop.xlane.xlu1 %80  ;;  %v84_v2 = vpop.xlane.xlu0 %83 }
 0x133   :  { %258 = vlog2.f32 %v81_v1 }
 0x134   :  { %260 = vlog2.f32 %v84_v2 }
 0x136   :  { %v87_v3 = vpop.xlane.xlu1 %86  ;;  %v90_v4 = vpop.xlane.xlu0 %89 }
 0x137   :  { %262 = vlog2.f32 %v87_v3  ;;  %v24_v3 = vld [vmem:[%s443_s1 + $0x28] sm:$0xff] }
 0x138   :  { %264 = vlog2.f32 %v90_v4 }
 0x139   :  { %v257_v5 = vpop.eup %256 }
 0x13a   :  { %v101_v6 = vmul.f32 0.6931472, %v257_v5  ;;  %v93_v7 = vpop.xlane.xlu1 %92  ;;  %v96_v8 = vpop.xlane.xlu0 %95 }
 0x13b   :  { %266 = vlog2.f32 %v93_v7 }
 0x13c   :  { %268 = vlog2.f32 %v96_v8  ;;  %v116_v9 = vadd.f32 %v101_v6, %v343_v16 }
 0x13d   :  { %v259_v10 = vpop.eup %258 }
 0x13e   :  { %v261_v11 = vpop.eup %260  ;;  %v103_v12 = vmul.f32 0.6931472, %v259_v10  ;;  %v99_v13 = vpop.xlane.xlu1 %98  ;;  %v148_v14 = vmul.f32 2.0, %v116_v9 }
 0x13f   :  { %v126_v15 = vpop.xlane.xlu0 %125  ;;  %v105_v18 = vmul.f32 0.6931472, %v261_v11  ;;  %270 = vlog2.f32 %v99_v13 }
 0x140   :  { %v156_v19 = vsub.f32 %v126_v15, %v148_v14  ;;  %v117_v20 = vadd.f32 %v103_v12, %v351_v22  ;;  %v26_v15 = vld [vmem:[%s443_s1 + $0x38] sm:$0xff] }
 0x141   :  { %v263_v21 = vpop.eup %262  ;;  %v118_v25 = vadd.f32 %v105_v18, %v345_v17 }
 0x142   :  { %v265_v26 = vpop.eup %264  ;;  %v107_v16 = vmul.f32 0.6931472, %v263_v21  ;;  %v149_v27 = vmul.f32 2.0, %v117_v20  ;;  %v129_v30 = vpop.xlane.xlu1 %128  ;;  %v191_v37 = vmul.f32 %v156_v19, %v19_v24 }
 0x143   :  { %v132_v31 = vpop.xlane.xlu0 %131  ;;  %v109_v32 = vmul.f32 0.6931472, %v265_v26  ;;  %v150_v36 = vmul.f32 2.0, %v118_v25 }
 0x144   :  { %v157_v22 = vsub.f32 %v129_v30, %v149_v27  ;;  %v119_v39 = vadd.f32 %v107_v16, %v353_v23  ;;  %v208_v23 = vsel %vm207_vm1, %v191_v37, 0.0 }
 0x145   :  { %v267_v17 = vpop.eup %266  ;;  %v158_v40 = vsub.f32 %v132_v31, %v150_v36  ;;  %v120_v41 = vadd.f32 %v109_v32, %v359_v28  ;;  %v23_v28 = vld [vmem:[%s443_s1 + $0x20] sm:$0xff] }
 0x146   :  { %v269_v42 = vpop.eup %268  ;;  %v111_v43 = vmul.f32 0.6931472, %v267_v17  ;;  %v192_v44 = vmul.f32 %v157_v22, %v20_v33  ;;  %v151_v45 = vmul.f32 2.0, %v119_v39  ;;  %v135_v46 = vpop.xlane.xlu1 %134 }
 0x147   :  { %v138_v47 = vpop.xlane.xlu0 %137  ;;  %v113_v48 = vmul.f32 0.6931472, %v269_v42  ;;  %v193_v49 = vmul.f32 %v158_v40, %v21_v38  ;;  %v152_v51 = vmul.f32 2.0, %v120_v41 }
 0x148   :  { %v209_v52 = vsel %vm207_vm1, %v192_v44, 0.0  ;;  %v159_v53 = vsub.f32 %v135_v46, %v151_v45  ;;  %v121_v54 = vadd.f32 %v111_v43, %v361_v29 }
 0x149   :  { %v271_v55 = vpop.eup %270  ;;  %v210_v56 = vadd.f32 %v209_v52, %v208_v23  ;;  %v160_v57 = vsub.f32 %v138_v47, %v152_v51  ;;  %v122_v58 = vadd.f32 %v113_v48, %v367_v34  ;;  %v211_v60 = vsel %vm207_vm1, %v193_v49, 0.0  ;;  %v25_v34 = vld [vmem:[%s443_s1 + $0x30] sm:$0xff] }
 0x14a   :  { %v115_v59 = vmul.f32 0.6931472, %v271_v55  ;;  %v194_v61 = vmul.f32 %v159_v53, %v22_v50  ;;  %v153_v62 = vmul.f32 2.0, %v121_v54  ;;  %v141_v63 = vpop.xlane.xlu1 %140 }
 0x14b   :  { %v144_v0 = vpop.xlane.xlu0 %143  ;;  %v212_v1 = vadd.f32 %v211_v60, %v210_v56  ;;  %v195_v2 = vmul.f32 %v160_v57, %v23_v28  ;;  %v154_v4 = vmul.f32 2.0, %v122_v58 }
 0x14c   :  { %v213_v29 = vsel %vm207_vm1, %v194_v61, 0.0  ;;  %v161_v5 = vsub.f32 %v141_v63, %v153_v62  ;;  %v123_v6 = vadd.f32 %v115_v59, %v369_v35 }
 0x14d   :  { %v214_v7 = vadd.f32 %v213_v29, %v212_v1  ;;  %v162_v8 = vsub.f32 %v144_v0, %v154_v4  ;;  %v215_v9 = vsel %vm207_vm1, %v195_v2, 0.0 }
 0x14e   :  { %v196_v10 = vmul.f32 %v161_v5, %v24_v3  ;;  %v155_v11 = vmul.f32 2.0, %v123_v6  ;;  %v147_v12 = vpop.xlane.xlu1 %146 }
 0x14f   :  { %v216_v13 = vadd.f32 %v215_v9, %v214_v7  ;;  %v197_v14 = vmul.f32 %v162_v8, %v25_v34 }
 0x150   :  { %v217_v18 = vsel %vm207_vm1, %v196_v10, 0.0  ;;  %v163_v19 = vsub.f32 %v147_v12, %v155_v11 }
 0x151   :  { %v218_v20 = vadd.f32 %v217_v18, %v216_v13  ;;  %v219_v35 = vsel %vm207_vm1, %v197_v14, 0.0 }
 0x152   :  { %v198_v21 = vmul.f32 %v163_v19, %v26_v15 }
 0x153   :  { %v220_v24 = vadd.f32 %v219_v35, %v218_v20 }
 0x154   :  { %v221_v25 = vsel %vm207_vm1, %v198_v21, 0.0 }
 0x155   :  { %v222_v26 = vadd.f32 %v221_v25, %v220_v24 }
 0x157   :  { %223 = vadd.xlane.f32.xlu0 %v222_v26 }
 0x1e4   :  { %v224_v16 = vpop.xlane.xlu0 %223 }
 0x1e5   :  { %v225_v27 = vrot.slane %v224_v16, 4 }
 0x1e7   :  { %v226_v30 = vadd.f32 %v225_v27, %v224_v16 }
 0x1e9   :  { %v227_v31 = vrot.slane %v226_v30, 2 }
 0x1eb   :  { %v228_v32 = vadd.f32 %v227_v31, %v226_v30 }
 0x1ed   :  { %v229_v33 = vrot.slane %v228_v32, 1 }
 0x1ef   :  { %v230_v36 = vadd.f32 %v229_v33, %v228_v32 }
 0x1f1   :  { %238 = vpush %v230_v36 }
 0x222   :  { %s239_s1 = spop %238 }
 0x223   :  { %v232_v37 = vstv %s239_s1 }
 0x224   :  { %233 = vst [vmem:[%s444_s2] sm:$0xff] %v232_v37 }

</bundles_post_ra>
